<compile_context>
chip_gen: v7x
topology: tpu7x:2x2x1
jax: 0.10.0
libtpu: 0.0.40
codegen_flags: <defaults>
</compile_context>

<pallas_src>
import jax
import jax.numpy as jnp
from jax.experimental import pallas as pl
from jax.experimental.pallas import tpu as pltpu

LANE = 128          # lane width: last block dim must be a multiple of this
MAX_TILE_M = 4096   # pixels (lanes) per grid step when tiling large inputs


def _fused_affine_kernel(a_ref, b_ref, x_ref, o_ref):
    """o = A @ X + b  (the whole repaired graph, folded).

    a_ref : (C, 2C)      folded weight  [W_eff@w1 | W_eff@w2]
    b_ref : (C, 1)       folded bias    W_eff@(b1+b2) + w2@b1 + b2
    x_ref : (2C, TILE_M) stacked inputs (channels on sublanes, pixels on lanes)
    o_ref : (C, TILE_M)
    """
    o_ref[...] = (
        jnp.dot(a_ref[...], x_ref[...], preferred_element_type=jnp.float32)
        + b_ref[...]
    ).astype(o_ref.dtype)


def _model_forward_impl(x1, x2, x3, x4, params):
    """Pallas version of Model.forward. x3, x4 are unused (as in the original)."""
    del x3, x4
    w1, b1, w2, b2 = params          # w: (C, C) == torch_weight[:, :, 0, 0], b: (C,)
    N, C, H, W = x1.shape
    Hp, Wp = H + 2, W + 2            # padding=1 growth from the first conv stage

    # ---- algebraic fold (tiny (C,C) matmuls, fused by XLA under jit) ----
    w_eff = jnp.eye(C, dtype=jnp.float32) + w2 @ w1                 # (C, C)
    a = jnp.concatenate([w_eff @ w1, w_eff @ w2], axis=1)           # (C, 2C)
    b_tot = (w_eff @ (b1 + b2) + w2 @ b1 + b2).reshape(C, 1)        # (C, 1)

    # ---- relayout: interior pixels only; channels->sublanes, pixels->lanes ----
    M = N * H * W

    def to_cm(x):
        return jnp.transpose(x.astype(jnp.float32), (1, 0, 2, 3)).reshape(C, M)

    x_cm = jnp.concatenate([to_cm(x1), to_cm(x2)], axis=0)          # (2C, M)

    tile_m = min(M + ((-M) % LANE), MAX_TILE_M)   # multiple of 128 by construction
    m_pad = (-M) % tile_m                         # pad pixels to a tile multiple
    Mp = M + m_pad
    x_cm = jnp.pad(x_cm, ((0, 0), (0, m_pad)))

    out_cm = pl.pallas_call(
        _fused_affine_kernel,
        out_shape=jax.ShapeDtypeStruct((C, Mp), jnp.float32),
        grid=(Mp // tile_m,),
        in_specs=[
            pl.BlockSpec((C, 2 * C), lambda i: (0, 0)),      # folded weight (resident)
            pl.BlockSpec((C, 1), lambda i: (0, 0)),          # folded bias  (resident)
            pl.BlockSpec((2 * C, tile_m), lambda i: (0, i)),  # stacked activations
        ],
        out_specs=pl.BlockSpec((C, tile_m), lambda i: (0, i)),
        compiler_params=pltpu.CompilerParams(
            dimension_semantics=("parallel",)),
    )(a, b_tot, x_cm)

    # ---- epilogue: interior from the kernel, constant border = b_tot/channel ----
    interior = jnp.transpose(out_cm[:, :M].reshape(C, N, H, W), (1, 0, 2, 3))
    full = jnp.broadcast_to(b_tot.reshape(1, C, 1, 1), (N, C, Hp, Wp))
    return full.at[:, :, 1:-1, 1:-1].set(interior)    # (N, C, H+2, W+2)


model_forward = jax.jit(_model_forward_impl)


def model_forward_ref(x1, x2, x3, x4, params):
    """Pure-jnp reference of the same (repaired) graph, for verification."""
    del x3, x4
    w1, b1, w2, b2 = params

    def conv_pad1(x, w, b):  # 1x1 conv with padding=1 on NCHW
        xp = jnp.pad(x.astype(jnp.float32), ((0, 0), (0, 0), (1, 1), (1, 1)))
        return jnp.einsum("oc,nchw->nohw", w, xp) + b[None, :, None, None]

    def conv(x, w, b):       # 1x1 conv, no padding
        return jnp.einsum("oc,nchw->nohw", w, x) + b[None, :, None, None]

    v1 = conv_pad1(x1, w1, b1)
    v2 = conv_pad1(x2, w2, b2)
    v3 = v1 + v2
    v4 = conv(v3, w1, b1)            # == conv1(pad(v3)) center window
    v5_center = conv(v4, w2, b2)     # == conv2(v4) center window
    return v3 + v5_center


if __name__ == "__main__":
    key = jax.random.PRNGKey(0)
    k1, k2, k3, k4, kw1, kb1, kw2, kb2 = jax.random.split(key, 8)

    # C=8 (not 3) so conv1(v3) is well-typed — see TODO(synk) header comment.
    N, C, H, W = 2, 8, 16, 16
    x1 = jax.random.normal(k1, (N, C, H, W), jnp.float32)
    x2 = jax.random.normal(k2, (N, C, H, W), jnp.float32)
    x3 = jax.random.normal(k3, (N, C, H, W), jnp.float32)  # unused by forward
    x4 = jax.random.normal(k4, (N, C, H, W), jnp.float32)  # unused by forward

    # Conv2d parameters: weight (Cout, Cin) == torch_weight[:, :, 0, 0]
    w1 = 0.1 * jax.random.normal(kw1, (C, C), jnp.float32)
    b1 = 0.1 * jax.random.normal(kb1, (C,), jnp.float32)
    w2 = 0.1 * jax.random.normal(kw2, (C, C), jnp.float32)
    b2 = 0.1 * jax.random.normal(kb2, (C,), jnp.float32)
    params = (w1, b1, w2, b2)

    out = jax.block_until_ready(model_forward(x1, x2, x3, x4, params))
    ref = model_forward_ref(x1, x2, x3, x4, params)

    assert out.shape == (N, C, H + 2, W + 2), out.shape
    assert jnp.allclose(out, ref, atol=1e-4, rtol=1e-4), "mismatch vs reference"
    print("KERNEL_OK")
</pallas_src>

<mosaic_0001>
module attributes {stable_mosaic.version = 11 : i64} {
  func.func @_fused_affine_kernel(%arg0: i32, %arg1: memref<8x16xf32, #tpu.memory_space<vmem>>, %arg2: memref<8x1xf32, #tpu.memory_space<vmem>>, %arg3: memref<16x512xf32, #tpu.memory_space<vmem>>, %arg4: memref<8x512xf32, #tpu.memory_space<vmem>>) attributes {dimension_semantics = [#tpu.dimension_semantics<parallel>], iteration_bounds = array<i64: 1>, scalar_prefetch = 0 : i64, scratch_operands = 0 : i64, tpu.core_type = #tpu.core_type<tc>, window_params = [{pipeline_mode = #tpu.pipeline_mode<synchronous>, transform_indices = @transform_0, window_bounds = array<i64: 8, 16>}, {pipeline_mode = #tpu.pipeline_mode<synchronous>, transform_indices = @transform_1, window_bounds = array<i64: 8, 1>}, {transform_indices = @transform_2, window_bounds = array<i64: 16, 512>}, {transform_indices = @transform_3, window_bounds = array<i64: 8, 512>}]} {
    %c0 = arith.constant 0 : index
    %c0_0 = arith.constant 0 : index
    %0 = vector.load %arg1[%c0, %c0_0] : memref<8x16xf32, #tpu.memory_space<vmem>>, vector<8x16xf32>
    %c0_1 = arith.constant 0 : index
    %c0_2 = arith.constant 0 : index
    %1 = vector.load %arg3[%c0_1, %c0_2] : memref<16x512xf32, #tpu.memory_space<vmem>>, vector<16x512xf32>
    %cst = arith.constant dense<0.000000e+00> : vector<8x512xf32>
    %2 = tpu.matmul %0, %1, %cst {dimension_numbers = #tpu.dot_dimension_numbers<[1], [0], [0], [1], [0, 0, 1, 1], [], []>} : vector<8x16xf32>, vector<16x512xf32>, vector<8x512xf32> -> vector<8x512xf32>
    %c0_3 = arith.constant 0 : index
    %c0_4 = arith.constant 0 : index
    %3 = vector.load %arg2[%c0_3, %c0_4] : memref<8x1xf32, #tpu.memory_space<vmem>>, vector<8x1xf32>
    %4 = vector.broadcast %3 : vector<8x1xf32> to vector<8x512xf32>
    %5 = arith.addf %2, %4 : vector<8x512xf32>
    %c0_5 = arith.constant 0 : index
    %c0_6 = arith.constant 0 : index
    %6 = vector.load %arg4[%c0_5, %c0_6] : memref<8x512xf32, #tpu.memory_space<vmem>>, vector<8x512xf32>
    tpu.vector_store %arg4[%c0_5, %c0_6], %5 {strides = array<i32>} : memref<8x512xf32, #tpu.memory_space<vmem>>, vector<8x512xf32>,
    return
  }
  func.func @transform_0(%arg0: i32) -> (i32, i32) {
    %c0_i32 = arith.constant 0 : i32
    %c0_i32_0 = arith.constant 0 : i32
    %c0_i32_1 = arith.constant 0 : i32
    return %c0_i32, %c0_i32_0 : i32, i32
  }
  func.func @transform_1(%arg0: i32) -> (i32, i32) {
    %c0_i32 = arith.constant 0 : i32
    %c0_i32_0 = arith.constant 0 : i32
    %c0_i32_1 = arith.constant 0 : i32
    return %c0_i32, %c0_i32_0 : i32, i32
  }
  func.func @transform_2(%arg0: i32) -> (i32, i32) {
    %c0_i32 = arith.constant 0 : i32
    %c0_i32_0 = arith.constant 0 : i32
    return %c0_i32, %arg0 : i32, i32
  }
  func.func @transform_3(%arg0: i32) -> (i32, i32) {
    %c0_i32 = arith.constant 0 : i32
    %c0_i32_0 = arith.constant 0 : i32
    return %c0_i32, %arg0 : i32, i32
  }
}

</mosaic_0001>

<bundles_post_ra>
// kernel: _model_forward_impl.1
= control target key start
LH: loop header
LB: loop body
LE: loop exit
PB: predicated region body
PF: predicated region fallthrough
CT: control target
= control target key end

     0   :  { %v196_v3 = vmov 0.0   ;;  %v197_v8 = vmov 0   ;;  %vm29_vm0 = vcmask 130048   ;;  %s260_s2 = inlined_call_operand.vmem [shape: f32[16,512], index: 2, kind: input, shape index: {}]   ;;  %s261_s1 = inlined_call_operand.vmem [shape: f32[8,1], index: 1, kind: input, shape index: {}]   ;;  %s262_s0 = inlined_call_operand.vmem [shape: f32[8,16], index: 0, kind: input, shape index: {}]   ;;  %s263_s3 = inlined_call_operand.vmem [shape: f32[8,512], index: 3, kind: output, shape index: {}]  }
   0x1   :  { %v16_v0 = vld [vmem:[%s260_s2 + $0x8] sm:$0xff]  ;;  %v18_v2 = vld [vmem:[%s260_s2 + $0x18] sm:$0xff]  ;;  %97 = vmatprep.mubr.f32.mxu0 %v196_v3  ;;  %168 = vmatprep.mubr.f32.mxu1 %v196_v3  ;;  %v15_v6 = vld [vmem:[%s260_s2] sm:$0xff] }
   0x2   :  { %v20_v1 = vld [vmem:[%s260_s2 + $0x28] sm:$0xff]  ;;  %v22_v5 = vld [vmem:[%s260_s2 + $0x38] sm:$0xff]  ;;  %v19_v7 = vld [vmem:[%s260_s2 + $0x20] sm:$0xff]  ;;  %195 = vset.pattern.permute.xlu0 %v197_v8 }
   0x3   :  { %v185_v4 = vpack.c.bf16 %v20_v1, %v16_v0  ;;  %v189_v9 = vpack.c.bf16 %v22_v5, %v18_v2  ;;  %v187_v10 = vpack.c.bf16 %v19_v7, %v15_v6  ;;  %v17_v11 = vld [vmem:[%s260_s2 + $0x10] sm:$0xff]  ;;  %v23_v14 = vld [vmem:[%s261_s1] sm:$0xff] }
   0x4   :  { %v21_v12 = vld [vmem:[%s260_s2 + $0x30] sm:$0xff]  ;;  %v14_v15 = vld [vmem:[%s262_s0] sm:$0xff]  ;;  %26 = vperm.xlu0 %195, %v23_v14  }
   0x5   :  { %186 = vmatprep.subr.bf16.mxu0 %v185_v4  ;;  %v191_v13 = vpack.c.bf16 %v21_v12, %v17_v11  ;;  %190 = vmatprep.subr.bf16.mxu1 %v189_v9 }
   0x6   :  { %188 = vmatpush1.bf16.msra.mxu0 %v187_v10 }
   0x7   :  { %192 = vmatpush1.bf16.msra.mxu1 %v191_v13 }
   0x9   :  { %183 = vmatmul.mubr.msk.f32.vlgmr.msra.gmra.mrb[0].mxu0 %vm29_vm0, %v14_v15 }
   0xa   :  { %184 = vmatmul.mubr.msk.f32.vlgmr.msra.gmra.mrb[0].mxu1 %vm29_vm0, %v14_v15 }
  0x83   :  { %v27_v16 = vpop.permute.xlu0 %26 }
  0xdc   :  { %v99_v17 = vpop.f32.mrb[0].mxu0 }
  0xdd   :  { %v100_v18 = vadd.f32 %v99_v17, %v27_v16  ;;  %v170_v19 = vpop.f32.mrb[0].mxu1  ;;  %v101_v20 = vpop.f32.mrb[1].mxu0 }
  0xde   :  { %v171_v21 = vadd.f32 %v170_v19, %v27_v16  ;;  %v102_v22 = vadd.f32 %v101_v20, %v27_v16  ;;  %v172_v23 = vpop.f32.mrb[1].mxu1 }
  0xdf   :  { %175 = vst [vmem:[%s263_s3] sm:$0xff] %v100_v18  ;;  %v173_v24 = vadd.f32 %v172_v23, %v27_v16 }
  0xe0   :  { %177 = vst [vmem:[%s263_s3 + $0x10] sm:$0xff] %v171_v21  ;;  %176 = vst [vmem:[%s263_s3 + $0x8] sm:$0xff] %v102_v22 }
  0xe1   :  { %178 = vst [vmem:[%s263_s3 + $0x18] sm:$0xff] %v173_v24 }

</bundles_post_ra>
